<compile_context>
chip_gen: v7x
topology: tpu7x:2x2x1
jax: 0.10.0
libtpu: 0.0.40
codegen_flags: <defaults>
</compile_context>

<pallas_src>
import jax
import jax.numpy as jnp
from jax.experimental import pallas as pl
from jax.experimental.pallas import tpu as pltpu

_LANE = 128
_SUBLANE = 8


def _make_kernel(S, SC):
    """Build the kernel closed over static source-length chunking."""
    chunks = [(s0, min(SC, S - s0)) for s0 in range(0, S, SC)]

    def kernel(x_ref, ctx_ref, w_in_t_ref, w_out_c_t_ref, w_out_x_t_ref,
               out_ref, attn_ref, wctx_ref):
        x = x_ref[...]                                             # (TB, Dp)

        # targetT = linear_in(input): MXU matmul against pre-transposed weight.
        target = jnp.dot(x, w_in_t_ref[...],
                         preferred_element_type=jnp.float32)       # (TB, Dp)
        tgt3 = target[:, None, :]                                  # (TB, 1, Dp)

        # Pass 1 -- attn scores = bmm(context, targetT).squeeze(2), chunked
        # over sourceL so no (TB, S, Dp) temporary is materialized.  Raw
        # scores are staged in the attn output block (same shape).
        for s0, sc in chunks:
            ctx_c = ctx_ref[:, pl.ds(s0, sc), :]                   # (TB, sc, Dp)
            attn_ref[:, pl.ds(s0, sc)] = jnp.sum(ctx_c * tgt3, axis=-1)

        # TODO(synk): applyMask (masked_fill_ with -inf) not wired; self.mask
        # is None on the reference module's default forward path.

        # softmax over sourceL (nn.Softmax() on a 2-D input == dim=1).
        scores = attn_ref[...]                                     # (TB, S)
        m = jnp.max(scores, axis=-1, keepdims=True)
        e = jnp.exp(scores - m)
        denom = jnp.sum(e, axis=-1, keepdims=True)
        attn_ref[...] = e * pl.reciprocal(denom, approx=False)

        # Pass 2 -- weightedContext = bmm(attn, context), chunked over sourceL,
        # accumulated into a small (TB, Dp) VMEM scratch.
        wctx_ref[...] = jnp.zeros_like(wctx_ref)
        for s0, sc in chunks:
            ctx_c = ctx_ref[:, pl.ds(s0, sc), :]                   # (TB, sc, Dp)
            a_c = attn_ref[:, pl.ds(s0, sc)]                       # (TB, sc)
            wctx_ref[...] += jnp.sum(a_c[:, :, None] * ctx_c, axis=1)

        # contextOutput = tanh(linear_out(cat([wctx, input], 1)))
        #               = tanh(wctx @ W_out[:, :D].T + x @ W_out[:, D:].T)
        out = jnp.tanh(
            jnp.dot(wctx_ref[...], w_out_c_t_ref[...],
                    preferred_element_type=jnp.float32)
            + jnp.dot(x, w_out_x_t_ref[...],
                      preferred_element_type=jnp.float32))
        out_ref[...] = out.astype(out_ref.dtype)

    return kernel


def _physical_vmem_bytes():
    """Per-TensorCore VMEM capacity; conservative fallback if the query fails."""
    try:
        return int(pltpu.get_tpu_info().vmem_capacity_bytes)
    except Exception:
        return 64 << 20  # v7x has the smallest per-TC VMEM; safe everywhere.


def _plan_tiling(B, S, Dp, SC):
    """Pick (TB, B_pad, vmem_limit_bytes) from a real per-tile VMEM bill."""
    bpe = 4  # f32
    phys = _physical_vmem_bytes()
    # ~3/4 of physical VMEM: ~96 MiB on v5e/v6e (128 MiB), ~48 MiB on v7x (64 MiB).
    vmem_limit = min((phys * 3) // 4, 100 << 20)

    # Grid-invariant bill: three (Dp, Dp) weight blocks (counted double-buffered
    # to be safe) + compiler slack.
    # TODO(synk): pipeline_mode=pl.Buffered(1) on the weight blocks would halve
    # this once the single-buffer path is verified on this JAX version.
    fixed = 2 * 3 * Dp * Dp * bpe + (2 << 20)

    # Per batch-row bill: double-buffered ctx/x/out/attn blocks, wctx scratch,
    # and ~2 chunk-sized elementwise temporaries from the S-chunked reductions.
    per_row = (2 * S * Dp * bpe          # ctx block (double-buffered)
               + 2 * 2 * Dp * bpe        # x + out blocks
               + 2 * S * bpe             # attn block
               + Dp * bpe                # wctx scratch
               + 2 * SC * Dp * bpe)      # chunk temporaries

    budget = max(vmem_limit - fixed, per_row)
    tb = max(1, budget // per_row)
    if tb >= B:
        return int(B), int(B), int(vmem_limit)
    tb = max(_SUBLANE, (tb // _SUBLANE) * _SUBLANE)   # sublane-aligned tile
    b_pad = ((B + tb - 1) // tb) * tb                 # no ragged last tile
    return int(tb), int(b_pad), int(vmem_limit)


def global_attention(x, ctx, w_in, w_out):
    """x: (B, D), ctx: (B, S, D), w_in: (D, D), w_out: (D, 2D) -> ((B, D), (B, S))."""
    B, D = x.shape
    _, S, _ = ctx.shape

    x = x.astype(jnp.float32)
    ctx = ctx.astype(jnp.float32)

    # Host-side (free) weight prep: transpose and split linear_out into the half
    # acting on weightedContext and the half acting on the raw input
    # (equivalent to concat-then-matmul).
    w_in_t = jnp.transpose(w_in).astype(jnp.float32)             # (D, D)
    w_out_c_t = jnp.transpose(w_out[:, :D]).astype(jnp.float32)  # (D, D)
    w_out_x_t = jnp.transpose(w_out[:, D:]).astype(jnp.float32)  # (D, D)

    # Lane-density: zero-pad the feature dim to a multiple of 128.  Exact:
    # padded features contribute nothing to any dot product and the padded
    # output columns are sliced off below.
    Dp = ((D + _LANE - 1) // _LANE) * _LANE
    if Dp != D:
        pd = Dp - D
        x = jnp.pad(x, ((0, 0), (0, pd)))
        ctx = jnp.pad(ctx, ((0, 0), (0, 0), (0, pd)))
        w_in_t = jnp.pad(w_in_t, ((0, pd), (0, pd)))
        w_out_c_t = jnp.pad(w_out_c_t, ((0, pd), (0, pd)))
        w_out_x_t = jnp.pad(w_out_x_t, ((0, pd), (0, pd)))

    # Source-length chunk used inside the kernel (bounds elementwise temporaries
    # independently of the full S).
    SC = min(S, 256)

    TB, B_pad, vmem_limit = _plan_tiling(B, S, Dp, SC)
    if B_pad != B:
        x = jnp.pad(x, ((0, B_pad - B), (0, 0)))
        ctx = jnp.pad(ctx, ((0, B_pad - B), (0, 0), (0, 0)))

    grid = (B_pad // TB,)

    cost = pl.CostEstimate(
        flops=int(4 * B_pad * S * Dp + 6 * B_pad * Dp * Dp),
        transcendentals=int(B_pad * S + B_pad * Dp),
        bytes_accessed=int(4 * (B_pad * S * Dp + 2 * B_pad * Dp
                                + B_pad * S + 3 * Dp * Dp)),
    )

    out, attn = pl.pallas_call(
        _make_kernel(S, SC),
        out_shape=(jax.ShapeDtypeStruct((B_pad, Dp), jnp.float32),
                   jax.ShapeDtypeStruct((B_pad, S), jnp.float32)),
        grid=grid,
        in_specs=[
            pl.BlockSpec((TB, Dp), lambda i: (i, 0)),        # x
            pl.BlockSpec((TB, S, Dp), lambda i: (i, 0, 0)),  # ctx (pipelined)
            pl.BlockSpec((Dp, Dp), lambda i: (0, 0)),        # w_in.T
            pl.BlockSpec((Dp, Dp), lambda i: (0, 0)),        # w_out[:, :D].T
            pl.BlockSpec((Dp, Dp), lambda i: (0, 0)),        # w_out[:, D:].T
        ],
        out_specs=(pl.BlockSpec((TB, Dp), lambda i: (i, 0)),
                   pl.BlockSpec((TB, S), lambda i: (i, 0))),
        scratch_shapes=[pltpu.VMEM((TB, Dp), jnp.float32)],  # wctx accumulator
        compiler_params=pltpu.CompilerParams(
            dimension_semantics=("parallel",),
            vmem_limit_bytes=vmem_limit,
        ),
        cost_estimate=cost,
    )(x, ctx, w_in_t, w_out_c_t, w_out_x_t)

    return out[:B, :D], attn[:B, :]


if __name__ == "__main__":
    B, S, D = 2, 8, 32
    key = jax.random.PRNGKey(0)
    kx, kc, kw = jax.random.split(key, 3)

    x = jax.random.normal(kx, (B, D), dtype=jnp.float32)
    ctx = jax.random.normal(kc, (B, S, D), dtype=jnp.float32)

    # Parameter init matching the module's __init__ shapes:
    #   linear_in.weight  (D, D)  -> torch.nn.init.eye => identity
    #   linear_out.weight (D, 2D) -> deterministic uniform (synthetic, no bias)
    w_in = jnp.eye(D, dtype=jnp.float32)
    bound = 1.0 / float(jnp.sqrt(jnp.float32(2 * D)))
    w_out = jax.random.uniform(kw, (D, 2 * D), dtype=jnp.float32,
                               minval=-bound, maxval=bound)

    out, attn = global_attention(x, ctx, w_in, w_out)
    jax.block_until_ready((out, attn))

    # Pure-JAX reference for correctness.
    target_ref = x @ w_in.T
    scores_ref = jnp.einsum('bsd,bd->bs', ctx, target_ref)
    attn_ref = jax.nn.softmax(scores_ref, axis=-1)
    wctx_ref = jnp.einsum('bs,bsd->bd', attn_ref, ctx)
    out_ref = jnp.tanh(jnp.concatenate([wctx_ref, x], axis=1) @ w_out.T)

    assert out.shape == (B, D) and attn.shape == (B, S)
    assert jnp.allclose(attn, attn_ref, atol=1e-5, rtol=1e-5)
    assert jnp.allclose(out, out_ref, atol=1e-5, rtol=1e-5)

    print("KERNEL_OK")
</pallas_src>

<mosaic_0001>
module attributes {stable_mosaic.version = 11 : i64} {
  func.func @kernel(%arg0: i32, %arg1: memref<2x128xf32, #tpu.memory_space<vmem>>, %arg2: memref<2x8x128xf32, #tpu.memory_space<vmem>>, %arg3: memref<128x128xf32, #tpu.memory_space<vmem>>, %arg4: memref<128x128xf32, #tpu.memory_space<vmem>>, %arg5: memref<128x128xf32, #tpu.memory_space<vmem>>, %arg6: memref<2x128xf32, #tpu.memory_space<vmem>>, %arg7: memref<2x8xf32, #tpu.memory_space<vmem>>, %arg8: memref<2x128xf32, #tpu.memory_space<vmem>>) attributes {dimension_semantics = [#tpu.dimension_semantics<parallel>], iteration_bounds = array<i64: 1>, scalar_prefetch = 0 : i64, scratch_operands = 1 : i64, tpu.core_type = #tpu.core_type<tc>, window_params = [{transform_indices = @transform_0, window_bounds = array<i64: 2, 128>}, {transform_indices = @transform_1, window_bounds = array<i64: 2, 8, 128>}, {pipeline_mode = #tpu.pipeline_mode<synchronous>, transform_indices = @transform_2, window_bounds = array<i64: 128, 128>}, {pipeline_mode = #tpu.pipeline_mode<synchronous>, transform_indices = @transform_3, window_bounds = array<i64: 128, 128>}, {pipeline_mode = #tpu.pipeline_mode<synchronous>, transform_indices = @transform_4, window_bounds = array<i64: 128, 128>}, {transform_indices = @transform_5, window_bounds = array<i64: 2, 128>}, {transform_indices = @transform_6, window_bounds = array<i64: 2, 8>}]} {
    %c0 = arith.constant 0 : index
    %c0_0 = arith.constant 0 : index
    %0 = vector.load %arg1[%c0, %c0_0] : memref<2x128xf32, #tpu.memory_space<vmem>>, vector<2x128xf32>
    %c0_1 = arith.constant 0 : index
    %c0_2 = arith.constant 0 : index
    %1 = vector.load %arg3[%c0_1, %c0_2] : memref<128x128xf32, #tpu.memory_space<vmem>>, vector<128x128xf32>
    %cst = arith.constant dense<0.000000e+00> : vector<2x128xf32>
    %2 = tpu.matmul %0, %1, %cst {dimension_numbers = #tpu.dot_dimension_numbers<[1], [0], [0], [1], [0, 0, 1, 1], [], []>} : vector<2x128xf32>, vector<128x128xf32>, vector<2x128xf32> -> vector<2x128xf32>
    %3 = vector.shape_cast %2 : vector<2x128xf32> to vector<2x1x128xf32>
    %c0_3 = arith.constant 0 : index
    %c0_4 = arith.constant 0 : index
    %c0_5 = arith.constant 0 : index
    %4 = vector.load %arg2[%c0_3, %c0_4, %c0_5] : memref<2x8x128xf32, #tpu.memory_space<vmem>>, vector<2x8x128xf32>
    %5 = vector.broadcast %3 : vector<2x1x128xf32> to vector<2x8x128xf32>
    %6 = arith.mulf %4, %5 : vector<2x8x128xf32>
    %cst_6 = arith.constant dense<0.000000e+00> : vector<2x8xf32>
    %7 = vector.multi_reduction <add>, %6, %cst_6 [2] : vector<2x8x128xf32> to vector<2x8xf32>
    %c0_7 = arith.constant 0 : index
    %c0_8 = arith.constant 0 : index
    %8 = vector.load %arg7[%c0_7, %c0_8] : memref<2x8xf32, #tpu.memory_space<vmem>>, vector<2x8xf32>
    tpu.vector_store %arg7[%c0_7, %c0_8], %7 {strides = array<i32>} : memref<2x8xf32, #tpu.memory_space<vmem>>, vector<2x8xf32>,
    %c0_9 = arith.constant 0 : index
    %c0_10 = arith.constant 0 : index
    %9 = vector.load %arg7[%c0_9, %c0_10] : memref<2x8xf32, #tpu.memory_space<vmem>>, vector<2x8xf32>
    %cst_11 = arith.constant dense<0xFF800000> : vector<2xf32>
    %10 = vector.multi_reduction <maximumf>, %9, %cst_11 [1] : vector<2x8xf32> to vector<2xf32>
    %11 = vector.shape_cast %10 : vector<2xf32> to vector<2x1xf32>
    %12 = vector.broadcast %11 : vector<2x1xf32> to vector<2x8xf32>
    %13 = arith.subf %9, %12 : vector<2x8xf32>
    %14 = math.exp %13 : vector<2x8xf32>
    %cst_12 = arith.constant dense<0.000000e+00> : vector<2xf32>
    %15 = vector.multi_reduction <add>, %14, %cst_12 [1] : vector<2x8xf32> to vector<2xf32>
    %16 = vector.shape_cast %15 : vector<2xf32> to vector<2x1xf32>
    %17 = tpu.reciprocal %16 : vector<2x1xf32> -> vector<2x1xf32>
    %18 = vector.broadcast %17 : vector<2x1xf32> to vector<2x8xf32>
    %19 = arith.mulf %14, %18 : vector<2x8xf32>
    %c0_13 = arith.constant 0 : index
    %c0_14 = arith.constant 0 : index
    %20 = vector.load %arg7[%c0_13, %c0_14] : memref<2x8xf32, #tpu.memory_space<vmem>>, vector<2x8xf32>
    tpu.vector_store %arg7[%c0_13, %c0_14], %19 {strides = array<i32>} : memref<2x8xf32, #tpu.memory_space<vmem>>, vector<2x8xf32>,
    %cst_15 = arith.constant 0.000000e+00 : f32
    %21 = vector.broadcast %cst_15 : f32 to vector<2x128xf32>
    %c0_16 = arith.constant 0 : index
    %c0_17 = arith.constant 0 : index
    %22 = vector.load %arg8[%c0_16, %c0_17] : memref<2x128xf32, #tpu.memory_space<vmem>>, vector<2x128xf32>
    tpu.vector_store %arg8[%c0_16, %c0_17], %21 {strides = array<i32>} : memref<2x128xf32, #tpu.memory_space<vmem>>, vector<2x128xf32>,
    %c0_18 = arith.constant 0 : index
    %c0_19 = arith.constant 0 : index
    %c0_20 = arith.constant 0 : index
    %23 = vector.load %arg2[%c0_18, %c0_19, %c0_20] : memref<2x8x128xf32, #tpu.memory_space<vmem>>, vector<2x8x128xf32>
    %c0_21 = arith.constant 0 : index
    %c0_22 = arith.constant 0 : index
    %24 = vector.load %arg7[%c0_21, %c0_22] : memref<2x8xf32, #tpu.memory_space<vmem>>, vector<2x8xf32>
    %c0_23 = arith.constant 0 : index
    %c0_24 = arith.constant 0 : index
    %25 = vector.load %arg8[%c0_23, %c0_24] : memref<2x128xf32, #tpu.memory_space<vmem>>, vector<2x128xf32>
    %26 = vector.shape_cast %24 : vector<2x8xf32> to vector<2x8x1xf32>
    %27 = vector.broadcast %26 : vector<2x8x1xf32> to vector<2x8x128xf32>
    %28 = arith.mulf %27, %23 : vector<2x8x128xf32>
    %cst_25 = arith.constant dense<0.000000e+00> : vector<2x128xf32>
    %29 = vector.multi_reduction <add>, %28, %cst_25 [1] : vector<2x8x128xf32> to vector<2x128xf32>
    %30 = arith.addf %25, %29 : vector<2x128xf32>
    %c0_26 = arith.constant 0 : index
    %c0_27 = arith.constant 0 : index
    %31 = vector.load %arg8[%c0_26, %c0_27] : memref<2x128xf32, #tpu.memory_space<vmem>>, vector<2x128xf32>
    tpu.vector_store %arg8[%c0_26, %c0_27], %30 {strides = array<i32>} : memref<2x128xf32, #tpu.memory_space<vmem>>, vector<2x128xf32>,
    %c0_28 = arith.constant 0 : index
    %c0_29 = arith.constant 0 : index
    %32 = vector.load %arg8[%c0_28, %c0_29] : memref<2x128xf32, #tpu.memory_space<vmem>>, vector<2x128xf32>
    %c0_30 = arith.constant 0 : index
    %c0_31 = arith.constant 0 : index
    %33 = vector.load %arg4[%c0_30, %c0_31] : memref<128x128xf32, #tpu.memory_space<vmem>>, vector<128x128xf32>
    %cst_32 = arith.constant dense<0.000000e+00> : vector<2x128xf32>
    %34 = tpu.matmul %32, %33, %cst_32 {dimension_numbers = #tpu.dot_dimension_numbers<[1], [0], [0], [1], [0, 0, 1, 1], [], []>} : vector<2x128xf32>, vector<128x128xf32>, vector<2x128xf32> -> vector<2x128xf32>
    %c0_33 = arith.constant 0 : index
    %c0_34 = arith.constant 0 : index
    %35 = vector.load %arg5[%c0_33, %c0_34] : memref<128x128xf32, #tpu.memory_space<vmem>>, vector<128x128xf32>
    %cst_35 = arith.constant dense<0.000000e+00> : vector<2x128xf32>
    %36 = tpu.matmul %0, %35, %cst_35 {dimension_numbers = #tpu.dot_dimension_numbers<[1], [0], [0], [1], [0, 0, 1, 1], [], []>} : vector<2x128xf32>, vector<128x128xf32>, vector<2x128xf32> -> vector<2x128xf32>
    %37 = arith.addf %34, %36 : vector<2x128xf32>
    %38 = math.tanh %37 : vector<2x128xf32>
    %c0_36 = arith.constant 0 : index
    %c0_37 = arith.constant 0 : index
    %39 = vector.load %arg6[%c0_36, %c0_37] : memref<2x128xf32, #tpu.memory_space<vmem>>, vector<2x128xf32>
    tpu.vector_store %arg6[%c0_36, %c0_37], %38 {strides = array<i32>} : memref<2x128xf32, #tpu.memory_space<vmem>>, vector<2x128xf32>,
    return
  }
  func.func @transform_0(%arg0: i32) -> (i32, i32) {
    %c0_i32 = arith.constant 0 : i32
    %c0_i32_0 = arith.constant 0 : i32
    return %arg0, %c0_i32 : i32, i32
  }
  func.func @transform_1(%arg0: i32) -> (i32, i32, i32) {
    %c0_i32 = arith.constant 0 : i32
    %c0_i32_0 = arith.constant 0 : i32
    %c0_i32_1 = arith.constant 0 : i32
    return %arg0, %c0_i32, %c0_i32_0 : i32, i32, i32
  }
  func.func @transform_2(%arg0: i32) -> (i32, i32) {
    %c0_i32 = arith.constant 0 : i32
    %c0_i32_0 = arith.constant 0 : i32
    %c0_i32_1 = arith.constant 0 : i32
    return %c0_i32, %c0_i32_0 : i32, i32
  }
  func.func @transform_3(%arg0: i32) -> (i32, i32) {
    %c0_i32 = arith.constant 0 : i32
    %c0_i32_0 = arith.constant 0 : i32
    %c0_i32_1 = arith.constant 0 : i32
    return %c0_i32, %c0_i32_0 : i32, i32
  }
  func.func @transform_4(%arg0: i32) -> (i32, i32) {
    %c0_i32 = arith.constant 0 : i32
    %c0_i32_0 = arith.constant 0 : i32
    %c0_i32_1 = arith.constant 0 : i32
    return %c0_i32, %c0_i32_0 : i32, i32
  }
  func.func @transform_5(%arg0: i32) -> (i32, i32) {
    %c0_i32 = arith.constant 0 : i32
    %c0_i32_0 = arith.constant 0 : i32
    return %arg0, %c0_i32 : i32, i32
  }
  func.func @transform_6(%arg0: i32) -> (i32, i32) {
    %c0_i32 = arith.constant 0 : i32
    %c0_i32_0 = arith.constant 0 : i32
    return %arg0, %c0_i32 : i32, i32
  }
}

</mosaic_0001>

<bundles_post_ra>
// kernel: tpu_custom_call.1
= control target key start
LH: loop header
LB: loop body
LE: loop exit
PB: predicated region body
PF: predicated region fallthrough
CT: control target
= control target key end

     0   :  { %12 = vsyncpa [#allocation4], 0  ;;  %s1110_s0 = inlined_call_operand.hbm [shape: f32[2,128], index: 0, kind: input, shape index: {}]   ;;  %s1111_s1 = inlined_call_operand.hbm [shape: f32[2,8,128], index: 1, kind: input, shape index: {}]   ;;  %s1112_s2 = inlined_call_operand.hbm [shape: f32[128,128], index: 2, kind: input, shape index: {}]   ;;  %s1113_s3 = inlined_call_operand.hbm [shape: f32[128,128], index: 3, kind: input, shape index: {}]   ;;  %s1114_s4 = inlined_call_operand.hbm [shape: f32[128,128], index: 4, kind: input, shape index: {}]   ;;  %s1115_s5 = inlined_call_operand.hbm [shape: f32[2,128], index: 5, kind: output, shape index: {0}]   ;;  %s1116_s6 = inlined_call_operand.hbm [shape: f32[2,8], index: 6, kind: output, shape index: {1}]  }
   0x1   :  { %13 = vsyncpa [#allocation7], 0 }
   0x2   :  { %14 = vsyncpa [#allocation10], 0 }
   0x3   :  { %15 = vsyncpa [#allocation5], 0 }
   0x4   :  { %16 = vsyncpa [#allocation14], 0  ;;  %s906_s21 = smov [#allocation6]   ;;  %s742_s25 = scalar_lea.hbm %s1111_s1, 256 }
   0x5   :  { %s32_s22 = sshll.u32 %s906_s21, 4  ;;  %p743_p0 = scmp.ne.s32.totalorder %s1111_s1, %s742_s25  ;;  %s33_s22 = int_to_ptr.vmem [resolvable:$true] %s32_s22 }
   0x6   :  { %p746_p1 = scmp.lt.u32.totalorder %s742_s25, %s1111_s1 }
   0x8   :  { %p748_p2 = pnand %p746_p1, %p743_p0 }
   0xa   :  { %751 = shalt.err (!%p748_p2)
}
   0xb   :  { %s752_s30 = scalar_lea.vmem %s33_s22, 256  ;;  %p757_p4 = scmp.lt.s32.totalorder %s33_s22, %s33_s22 }
   0xc   :  { %p753_p3 = scmp.ne.s32.totalorder %s33_s22, %s752_s30  ;;  %p758_p5 = scmp.lt.s32.totalorder %s752_s30, %s752_s30 }
   0xe   :  { %p759_p6 = por %p758_p5, %p757_p4 }
  0x10   :  { %p760_p7 = pnand %p759_p6, %p753_p3 }
  0x12   :  { %763 = shalt.err (!%p760_p7)
}
  0x13   :  { %s907_s7 = smov 128   ;;  %s908_s8 = smov 8  }
  0x14   :  { %38 = dma.hbm_to_vmem [thread:$0]  %s1111_s1, 256, %s33_s22, [#allocation7], %s907_s7, %s907_s7, %s908_s8  }
  0x15   :  { %s909_s11 = smov [#allocation9]   ;;  %s910_s13 = smov [#allocation3]  }
  0x16   :  { %s56_s12 = sshll.u32 %s909_s11, 4  ;;  %s23_s14 = sshll.u32 %s910_s13, 4  ;;  %s57_s12 = int_to_ptr.vmem [resolvable:$true] %s56_s12  ;;  %s24_s14 = int_to_ptr.vmem [resolvable:$true] %s23_s14 }
  0x17   :  { %s764_s17 = scalar_lea.hbm %s1113_s3, 2048 }
  0x18   :  { %p765_p8 = scmp.ne.s32.totalorder %s1113_s3, %s764_s17  ;;  %p768_p9 = scmp.lt.u32.totalorder %s764_s17, %s1113_s3 }
  0x1a   :  { %p770_p10 = pnand %p768_p9, %p765_p8 }
  0x1c   :  { %773 = shalt.err (!%p770_p10)
}
  0x1d   :  { %s774_s1 = scalar_lea.vmem %s57_s12, 2048  ;;  %p779_p12 = scmp.lt.s32.totalorder %s57_s12, %s57_s12 }
  0x1e   :  { %p775_p11 = scmp.ne.s32.totalorder %s57_s12, %s774_s1  ;;  %p780_p13 = scmp.lt.s32.totalorder %s774_s1, %s774_s1 }
  0x20   :  { %p781_p0 = por %p780_p13, %p779_p12 }
  0x22   :  { %p782_p1 = pnand %p781_p0, %p775_p11 }
  0x24   :  { %785 = shalt.err (!%p782_p1)
}
  0x25   :  { %62 = dma.hbm_to_vmem [thread:$0]  %s1113_s3, 2048, %s57_s12, [#allocation10], %s907_s7, %s907_s7, %s908_s8  }
  0x26   :  { %s786_s26 = scalar_lea.hbm %s1110_s0, 32 }
  0x27   :  { %p787_p2 = scmp.ne.s32.totalorder %s1110_s0, %s786_s26  ;;  %p790_p3 = scmp.lt.u32.totalorder %s786_s26, %s1110_s0 }
  0x29   :  { %p792_p4 = pnand %p790_p3, %p787_p2 }
  0x2b   :  { %795 = shalt.err (!%p792_p4)
}
  0x2c   :  { %s796_s9 = scalar_lea.vmem %s24_s14, 32  ;;  %p801_p6 = scmp.lt.s32.totalorder %s24_s14, %s24_s14 }
  0x2d   :  { %p797_p5 = scmp.ne.s32.totalorder %s24_s14, %s796_s9  ;;  %p802_p7 = scmp.lt.s32.totalorder %s796_s9, %s796_s9 }
  0x2f   :  { %p803_p8 = por %p802_p7, %p801_p6 }
  0x31   :  { %p804_p9 = pnand %p803_p8, %p797_p5 }
  0x33   :  { %807 = shalt.err (!%p804_p9)
}
  0x34   :  { %26 = dma.hbm_to_vmem [thread:$0]  %s1110_s0, 32, %s24_s14, [#allocation4]  }
  0x35   :  { %s911_s11 = smov [#allocation8]   ;;  %s912_s13 = smov [#allocation11]  }
  0x36   :  { %s44_s12 = sshll.u32 %s911_s11, 4  ;;  %s68_s15 = sshll.u32 %s912_s13, 4  ;;  %s45_s12 = int_to_ptr.vmem [resolvable:$true] %s44_s12  ;;  %s69_s15 = int_to_ptr.vmem [resolvable:$true] %s68_s15 }
  0x37   :  { %s808_s18 = scalar_lea.hbm %s1112_s2, 2048 }
  0x38   :  { %p809_p10 = scmp.ne.s32.totalorder %s1112_s2, %s808_s18  ;;  %p812_p11 = scmp.lt.u32.totalorder %s808_s18, %s1112_s2 }
  0x3a   :  { %p814_p12 = pnand %p812_p11, %p809_p10 }
  0x3c   :  { %817 = shalt.err (!%p814_p12)
}
  0x3d   :  { %s818_s0 = scalar_lea.vmem %s45_s12, 2048  ;;  %p823_p0 = scmp.lt.s32.totalorder %s45_s12, %s45_s12 }
  0x3e   :  { %p819_p13 = scmp.ne.s32.totalorder %s45_s12, %s818_s0  ;;  %p824_p1 = scmp.lt.s32.totalorder %s818_s0, %s818_s0 }
  0x40   :  { %p825_p2 = por %p824_p1, %p823_p0 }
  0x42   :  { %p826_p3 = pnand %p825_p2, %p819_p13 }
  0x44   :  { %829 = shalt.err (!%p826_p3)
}
  0x45   :  { %50 = dma.hbm_to_vmem [thread:$0]  %s1112_s2, 2048, %s45_s12, [#allocation7], %s907_s7, %s907_s7, %s908_s8  }
  0x46   :  { %s830_s25 = scalar_lea.hbm %s1114_s4, 2048 }
  0x47   :  { %p831_p4 = scmp.ne.s32.totalorder %s1114_s4, %s830_s25  ;;  %p834_p5 = scmp.lt.u32.totalorder %s830_s25, %s1114_s4 }
  0x49   :  { %p836_p6 = pnand %p834_p5, %p831_p4 }
  0x4b   :  { %839 = shalt.err (!%p836_p6)
}
  0x4c   :  { %s840_s30 = scalar_lea.vmem %s69_s15, 2048  ;;  %p845_p8 = scmp.lt.s32.totalorder %s69_s15, %s69_s15 }
  0x4d   :  { %p841_p7 = scmp.ne.s32.totalorder %s69_s15, %s840_s30  ;;  %p846_p9 = scmp.lt.s32.totalorder %s840_s30, %s840_s30 }
  0x4f   :  { %p847_p10 = por %p846_p9, %p845_p8 }
  0x51   :  { %p848_p11 = pnand %p847_p10, %p841_p7 }
  0x53   :  { %851 = shalt.err (!%p848_p11)
}
  0x54   :  { %74 = dma.hbm_to_vmem [thread:$0]  %s1114_s4, 2048, %s69_s15, [#allocation10], %s907_s7, %s907_s7, %s908_s8  }
  0x55   :  { %896 = dma.done.wait [#allocation4], 32  }
  0x56   :  { %897 = vsyncadd [#allocation4], 4294967264 }
  0x57   :  { %898 = dma.done.wait [#allocation7], 2304  }
  0x58   :  { %899 = vsyncadd [#allocation7], 4294964992 }
  0x59   :  { %900 = dma.done.wait [#allocation10], 4096  }
  0x5a   :  { %901 = vsyncadd [#allocation10], 4294963200  ;;  %v913_v0 = vmov 0.0|0.0   ;;  %vm914_vm0 = vmmov 0   ;;  %v915_v1 = vmov 0.0   ;;  %v91_v2 = vld [vmem:[#allocation8] sm:$0xff]  ;;  %v181_v29 = vlaneseq }
  0x5b   :  { %649 = vmatprep.subr.bf16.mxu0 %v913_v0  ;;  %576 = vmatprep.mubr.msk.f32.mxu0 %vm914_vm0, %v915_v1  ;;  %248 = vst [vmem:[#allocation2] sm:$0x3] %v915_v1  ;;  %v92_v3 = vld [vmem:[#allocation8 + $0x8] sm:$0xff]  ;;  %v93_v4 = vld [vmem:[#allocation8 + $0x10] sm:$0xff]  ;;  %v94_v6 = vld [vmem:[#allocation8 + $0x18] sm:$0xff]  ;;  %vm230_vm1 = vcmask 1041409  }
  0x5c   :  { %673 = vmatprep.subr.bf16.mxu1 %v913_v0  ;;  %611 = vmatprep.mubr.msk.f32.mxu1 %vm914_vm0, %v915_v1  ;;  %v650_v5 = vpack.c.bf16 %v92_v3, %v91_v2  ;;  %v653_v7 = vpack.c.bf16 %v94_v6, %v93_v4  ;;  %v95_v8 = vld [vmem:[#allocation8 + $0x20] sm:$0xff]  ;;  %v96_v9 = vld [vmem:[#allocation8 + $0x28] sm:$0xff]  ;;  %v97_v11 = vld [vmem:[#allocation8 + $0x30] sm:$0xff]  ;;  %v916_v27 = vmov 1966171168   ;;  %v1043_v31 = vshrl.u32 %v181_v29, 7 }
  0x5d   :  { %v656_v10 = vpack.c.bf16 %v96_v9, %v95_v8  ;;  %v98_v12 = vld [vmem:[#allocation8 + $0x38] sm:$0xff]  ;;  %v99_v14 = vld [vmem:[#allocation8 + $0x40] sm:$0xff]  ;;  %v100_v15 = vld [vmem:[#allocation8 + $0x48] sm:$0xff]  ;;  %v179_v28 = vunpack.c.l.s4 %v916_v27  ;;  %v221_v46 = vand.u32 127, %v181_v29  ;;  %vm233_vm2 = vcmask 58368   ;;  %s917_s4 = smov [#allocation13]  }
  0x5e   :  { %651 = vmatpush3.bf16.msra.mxu0 %v650_v5  ;;  %v659_v13 = vpack.c.bf16 %v98_v12, %v97_v11  ;;  %v662_v16 = vpack.c.bf16 %v100_v15, %v99_v14  ;;  %v101_v17 = vld [vmem:[#allocation8 + $0x50] sm:$0xff]  ;;  %v102_v18 = vld [vmem:[#allocation8 + $0x58] sm:$0xff]  ;;  %v103_v20 = vld [vmem:[#allocation8 + $0x60] sm:$0xff]  ;;  %v1047_v36 = vsub.s32 0, %v1043_v31  ;;  %s478_s7 = sshll.u32 %s917_s4, 4  ;;  %s479_s7 = int_to_ptr.vmem [resolvable:$true] %s478_s7 }
  0x5f   :  { %652 = vmatprep.subr.bf16.mxu0 %v913_v0  ;;  %v665_v19 = vpack.c.bf16 %v102_v18, %v101_v17  ;;  %v104_v21 = vld [vmem:[#allocation8 + $0x68] sm:$0xff]  ;;  %v105_v23 = vld [vmem:[#allocation8 + $0x70] sm:$0xff]  ;;  %v106_v24 = vld [vmem:[#allocation8 + $0x78] sm:$0xff]  ;;  %v180_v30 = vunpack.c.0.s8 %v179_v28  ;;  %v224_v48 = vsub.s32 %v221_v46, %v1043_v31  ;;  %s852_s8 = scalar_lea.vmem %s479_s7, 32  ;;  %p857_p13 = scmp.lt.s32.totalorder %s479_s7, %s479_s7 }
  0x60   :  { %v668_v22 = vpack.c.bf16 %v104_v21, %v103_v20  ;;  %v671_v25 = vpack.c.bf16 %v106_v24, %v105_v23  ;;  %v1040_v26 = vld [vmem:[#allocation3] sm:$0x3]  ;;  %v1049_v39 = vld [vmem:[#allocation6] sm:$0xff]  ;;  %v1054_v44 = vld [vmem:[#allocation6 + $0x8] sm:$0xff]  ;;  %p853_p12 = scmp.ne.s32.totalorder %s479_s7, %s852_s8  ;;  %p858_p0 = scmp.lt.s32.totalorder %s852_s8, %s852_s8 }
  0x61   :  { %v183_v32 = vsub.s32 %v180_v30, %v1043_v31  ;;  %v304_v60 = vld [vmem:[#allocation11] sm:$0xff]  ;;  %v305_v61 = vld [vmem:[#allocation11 + $0x8] sm:$0xff]  ;;  %v306_v62 = vld [vmem:[#allocation11 + $0x10] sm:$0xff] }
  0x62   :  { %654 = vmatpush3.bf16.msra.mxu0 %v653_v7  ;;  %v674_v63 = vpack.c.bf16 %v305_v61, %v304_v60  ;;  %v307_v2 = vld [vmem:[#allocation11 + $0x18] sm:$0xff]  ;;  %v308_v4 = vld [vmem:[#allocation11 + $0x20] sm:$0xff]  ;;  %v309_v5 = vld [vmem:[#allocation11 + $0x28] sm:$0xff]  ;;  %p859_p1 = por %p858_p0, %p857_p13 }
  0x63   :  { %655 = vmatprep.subr.bf16.mxu0 %v913_v0  ;;  %v677_v3 = vpack.c.bf16 %v307_v2, %v306_v62  ;;  %v680_v6 = vpack.c.bf16 %v309_v5, %v308_v4  ;;  %v310_v7 = vld [vmem:[#allocation11 + $0x30] sm:$0xff]  ;;  %v311_v8 = vld [vmem:[#allocation11 + $0x38] sm:$0xff]  ;;  %v313_v11 = vld [vmem:[#allocation11 + $0x48] sm:$0xff] }
  0x64   :  { %675 = vmatpush3.bf16.msra.mxu1 %v674_v63  ;;  %v683_v9 = vpack.c.bf16 %v311_v8, %v310_v7  ;;  %v315_v14 = vld [vmem:[#allocation11 + $0x58] sm:$0xff]  ;;  %v317_v17 = vld [vmem:[#allocation11 + $0x68] sm:$0xff]  ;;  %v292_v30 = vld [vmem:[#allocation9 + $0x20] sm:$0xff]  ;;  %p860_p2 = pnand %p859_p1, %p853_p12 }
  0x65   :  { %676 = vmatprep.subr.bf16.mxu1 %v913_v0  ;;  %v319_v20 = vld [vmem:[#allocation11 + $0x78] sm:$0xff]  ;;  %v289_v23 = vld [vmem:[#allocation9 + $0x8] sm:$0xff] }
  0x66   :  { %657 = vmatpush3.bf16.msra.mxu0 %v656_v10  ;;  %v312_v10 = vld [vmem:[#allocation11 + $0x40] sm:$0xff]  ;;  %v291_v27 = vld [vmem:[#allocation9 + $0x18] sm:$0xff]  ;;  %v252_v7 = vld [vmem:[#allocation2] sm:$0x3] }
  0x67   :  { %658 = vmatprep.subr.bf16.mxu0 %v913_v0  ;;  %v686_v12 = vpack.c.bf16 %v313_v11, %v312_v10 }
  0x68   :  { %678 = vmatpush3.bf16.msra.mxu1 %v677_v3 }
  0x69   :  { %679 = vmatprep.subr.bf16.mxu1 %v913_v0 }
  0x6a   :  { %660 = vmatpush3.bf16.msra.mxu0 %v659_v13  ;;  %v314_v13 = vld [vmem:[#allocation11 + $0x50] sm:$0xff] }
  0x6b   :  { %661 = vmatprep.subr.bf16.mxu0 %v913_v0  ;;  %v689_v15 = vpack.c.bf16 %v315_v14, %v314_v13 }
  0x6c   :  { %681 = vmatpush3.bf16.msra.mxu1 %v680_v6 }
  0x6d   :  { %682 = vmatprep.subr.bf16.mxu1 %v913_v0 }
  0x6e   :  { %663 = vmatpush3.bf16.msra.mxu0 %v662_v16  ;;  %v316_v16 = vld [vmem:[#allocation11 + $0x60] sm:$0xff] }
  0x6f   :  { %664 = vmatprep.subr.bf16.mxu0 %v913_v0  ;;  %v692_v18 = vpack.c.bf16 %v317_v17, %v316_v16 }
  0x70   :  { %684 = vmatpush3.bf16.msra.mxu1 %v683_v9 }
  0x71   :  { %685 = vmatprep.subr.bf16.mxu1 %v913_v0 }
  0x72   :  { %666 = vmatpush3.bf16.msra.mxu0 %v665_v19  ;;  %v318_v19 = vld [vmem:[#allocation11 + $0x70] sm:$0xff] }
  0x73   :  { %667 = vmatprep.subr.bf16.mxu0 %v913_v0  ;;  %v695_v21 = vpack.c.bf16 %v319_v20, %v318_v19 }
  0x74   :  { %687 = vmatpush3.bf16.msra.mxu1 %v686_v12 }
  0x75   :  { %688 = vmatprep.subr.bf16.mxu1 %v913_v0 }
  0x76   :  { %669 = vmatpush3.bf16.msra.mxu0 %v668_v22  ;;  %v288_v22 = vld [vmem:[#allocation9] sm:$0xff] }
  0x77   :  { %670 = vmatprep.subr.bf16.mxu0 %v913_v0  ;;  %v698_v24 = vpack.c.bf16 %v289_v23, %v288_v22 }
  0x78   :  { %690 = vmatpush3.bf16.msra.mxu1 %v689_v15 }
  0x79   :  { %691 = vmatprep.subr.bf16.mxu1 %v913_v0 }
  0x7a   :  { %672 = vmatpush3.bf16.msra.mxu0 %v671_v25  ;;  %v290_v25 = vld [vmem:[#allocation9 + $0x10] sm:$0xff] }
  0x7b   :  { %v701_v28 = vpack.c.bf16 %v291_v27, %v290_v25 }
  0x7c   :  { %693 = vmatpush3.bf16.msra.mxu1 %v692_v18 }
  0x7d   :  { %577 = vmatmul.mubr.f32.vlgmr.msra.gmra.mrb[0].mxu0 %v1040_v26  ;;  %694 = vmatprep.subr.bf16.mxu1 %v913_v0 }
  0x80   :  { %696 = vmatpush3.bf16.msra.mxu1 %v695_v21 }
  0x81   :  { %697 = vmatprep.subr.bf16.mxu1 %v913_v0 }
  0x83   :  { %612 = vmatmul.mubr.f32.vlgmr.msra.gmra.mrb[0].mxu1 %v1040_v26  ;;  %v294_v26 = vld [vmem:[#allocation9 + $0x30] sm:$0xff] }
  0x84   :  { %699 = vmatpush3.bf16.msra.mxu1 %v698_v24  ;;  %646 = vmatprep.mubr.msk.f32.mxu1 %vm914_vm0, %v915_v1 }
  0x85   :  { %700 = vmatprep.subr.bf16.mxu1 %v913_v0 }
  0x88   :  { %702 = vmatpush3.bf16.msra.mxu1 %v701_v28 }
  0x89   :  { %703 = vmatprep.subr.bf16.mxu1 %v913_v0 }
 0x150   :  { %v173_v33 = vpop.f32.mrb[0].mxu0 }
 0x151   :  { %v184_v34 = vrot.slane %v173_v33, %v183_v32  ;;  %v578_v35 = vpop.f32.mrb[1].mxu0 }
 0x153   :  { %v185_v37 = vcombine.high %v184_v34, %v184_v34  ;;  %v192_v38 = vrot.slane %v184_v34, %v183_v32 }
 0x155   :  { %v199_v40 = vrot.slane %v185_v37, %v183_v32  ;;  %v205_v41 = vrot.slane %v192_v38, %v1047_v36  ;;  %v293_v32 = vld [vmem:[#allocation9 + $0x28] sm:$0xff]  ;;  %v295_v37 = vld [vmem:[#allocation9 + $0x38] sm:$0xff]  ;;  %v262_v38 = vsub.s32 1, %v1043_v31  ;;  %v300_v31 = vld [vmem:[#allocation9 + $0x60] sm:$0xff] }
 0x156   :  { %v704_v34 = vpack.c.bf16 %v293_v32, %v292_v30  ;;  %v707_v1 = vpack.c.bf16 %v295_v37, %v294_v26 }
 0x157   :  { %v212_v42 = vmul.f32 %v205_v41, %v1049_v39  ;;  %v209_v43 = vrot.slane %v199_v40, %v1047_v36  ;;  %v296_v40 = vld [vmem:[#allocation9 + $0x40] sm:$0xff]  ;;  %v297_v41 = vld [vmem:[#allocation9 + $0x48] sm:$0xff] }
 0x158   :  { %705 = vmatpush3.bf16.msra.mxu1 %v704_v34 }
 0x159   :  { %214 = vadd.xlane.f32.xlu0 %v212_v42  ;;  %v213_v45 = vmul.f32 %v209_v43, %v1054_v44  ;;  %706 = vmatprep.subr.bf16.mxu1 %v913_v0  ;;  %v710_v42 = vpack.c.bf16 %v297_v41, %v296_v40 }
 0x15c   :  { %708 = vmatpush3.bf16.msra.mxu1 %v707_v1 }
 0x15d   :  { %216 = vadd.xlane.f32.xlu0 %v213_v45  ;;  %709 = vmatprep.subr.bf16.mxu1 %v913_v0 }
 0x160   :  { %711 = vmatpush3.bf16.msra.mxu1 %v710_v42 }
 0x161   :  { %712 = vmatprep.subr.bf16.mxu1 %v913_v0 }
 0x1e6   :  { %v215_v47 = vpop.xlane.xlu0 %214 }
 0x1e7   :  { %v225_v50 = vrot.slane %v215_v47, %v224_v48  ;;  %v298_v47 = vld [vmem:[#allocation9 + $0x50] sm:$0xff] }
 0x1ea   :  { %v217_v49 = vpop.xlane.xlu0 %216 }
 0x1eb   :  { %v229_v51 = vrot.slane %v217_v49, %v224_v48  ;;  %v299_v48 = vld [vmem:[#allocation9 + $0x58] sm:$0xff] }
 0x1ec   :  { %v713_v49 = vpack.c.bf16 %v299_v48, %v298_v47 }
 0x1ed   :  { %v231_v52 = vsel %vm230_vm1, %v229_v51, %v225_v50  ;;  %v301_v50 = vld [vmem:[#allocation9 + $0x68] sm:$0xff] }
 0x1ee   :  { %234 = vst.msk [vmem:[#allocation13] sm:$0x3] %vm233_vm2, %v231_v52  ;;  %714 = vmatpush3.bf16.msra.mxu1 %v713_v49  ;;  %v716_v51 = vpack.c.bf16 %v301_v50, %v300_v31  ;;  %v302_v52 = vld [vmem:[#allocation9 + $0x70] sm:$0xff] }
 0x1ef   :  { %715 = vmatprep.subr.bf16.mxu1 %v913_v0 }
 0x1f2   :  { %717 = vmatpush3.bf16.msra.mxu1 %v716_v51 }
 0x1f3   :  { %718 = vmatprep.subr.bf16.mxu1 %v913_v0 }
 0x1f5   :  { %v235_v53 = vld [vmem:[#allocation13] sm:$0x3] }
 0x1f6   :  { %v236_v54 = vsel %vm233_vm2, %v235_v53, -inf }
 0x1f7   :  { %237 = vmax.xlane.f32.xlu1 %v236_v54 }
 0x284   :  { %v238_v55 = vpop.xlane.xlu1 %237 }
 0x285   :  { %v239_v56 = vsub.f32 %v235_v53, %v238_v55  ;;  %v303_v53 = vld [vmem:[#allocation9 + $0x78] sm:$0xff] }
 0x286   :  { %v719_v54 = vpack.c.bf16 %v303_v53, %v302_v52 }
 0x287   :  { %v240_v57 = vmul.f32 1.442695, %v239_v56 }
 0x288   :  { %720 = vmatpush3.bf16.msra.mxu1 %v719_v54 }
 0x289   :  { %736 = vpow2.f32 %v240_v57 }
 0x293   :  { %v737_v58 = vpop.eup %736 }
 0x294   :  { %v242_v59 = vsel %vm233_vm2, %v737_v58, 0.0 }
 0x295   :  { %243 = vadd.xlane.f32.xlu1 %v242_v59 }
 0x322   :  { %v244_v29 = vpop.xlane.xlu1 %243 }
 0x323   :  { %738 = vrcp.f32 %v244_v29 }
 0x32d   :  { %v739_v33 = vpop.eup %738 }
 0x32e   :  { %v246_v35 = vmul.f32 %v739_v33, %v737_v58 }
 0x330   :  { %247 = vst.msk [vmem:[#allocation13] sm:$0x3] %vm233_vm2, %v246_v35 }
 0x337   :  { %v251_v43 = vld [vmem:[#allocation13] sm:$0x3] }
 0x338   :  { %v263_v45 = vrot.slane %v251_v43, %v262_v38  ;;  %v256_v46 = vrot.slane %v251_v43, %v1047_v36 }
 0x33a   :  { %265 = vbcast.lane.b32.xlu1 %v263_v45, 256  ;;  %258 = vbcast.lane.b32.xlu0 %v256_v46, 256 }
 0x3ac   :  { %v266_v36 = vpop.permute.xlu1 %265  ;;  %v259_v55 = vpop.permute.xlu0 %258 }
 0x3ad   :  { %v268_v56 = vmul.f32 %v266_v36, %v1054_v44  ;;  %v267_v57 = vmul.f32 %v259_v55, %v1049_v39 }
 0x3af   :  { %v275_v58 = vrot.slane %v268_v56, 4  ;;  %v269_v59 = vrot.slane %v267_v57, 4 }
 0x3b1   :  { %v276_v60 = vadd.f32 %v275_v58, %v268_v56  ;;  %v270_v61 = vadd.f32 %v269_v59, %v267_v57 }
 0x3b3   :  { %v277_v62 = vrot.slane %v276_v60, 2  ;;  %v271_v63 = vrot.slane %v270_v61, 2 }
 0x3b5   :  { %v278_v2 = vadd.f32 %v277_v62, %v276_v60  ;;  %v272_v3 = vadd.f32 %v271_v63, %v270_v61 }
 0x3b7   :  { %v279_v4 = vrot.slane %v278_v2, 1  ;;  %v273_v5 = vrot.slane %v272_v3, 1 }
 0x3b9   :  { %v280_v6 = vadd.f32 %v279_v4, %v278_v2  ;;  %v274_v0 = vadd.f32 %v273_v5, %v272_v3 }
 0x3bb   :  { %v283_v8 = vsel %vm230_vm1, %v280_v6, %v274_v0 }
 0x3bc   :  { %v285_v9 = vadd.f32 %v283_v8, %v252_v7 }
 0x3be   :  { %286 = vst [vmem:[#allocation2] sm:$0x3] %v285_v9 }
 0x3c5   :  { %v287_v44 = vld [vmem:[#allocation2] sm:$0x3] }
 0x3c6   :  { %647 = vmatmul.mubr.f32.vlgmr.msra.gmra.mrb[0].mxu1 %v287_v44 }
 0x3c7   :  { %863 = shalt.err (!%p860_p2)
}
 0x3c8   :  { %s864_s11 = scalar_lea.hbm %s1116_s6, 32 }
 0x3c9   :  { %p865_p3 = scmp.ne.s32.totalorder %s1116_s6, %s864_s11  ;;  %p868_p4 = scmp.lt.u32.totalorder %s864_s11, %s1116_s6 }
 0x3cb   :  { %p870_p5 = pnand %p868_p4, %p865_p3 }
 0x3cd   :  { %873 = shalt.err (!%p870_p5)
}
 0x3ce   :  { %481 = dma.vmem_to_hbm [thread:$0]  %s479_s7, 32, %s1116_s6, [#allocation14]  }
 0x3cf   :  { %s918_s19 = smov [#allocation12]  }
 0x3d0   :  { %s468_s20 = sshll.u32 %s918_s19, 4  ;;  %s469_s20 = int_to_ptr.vmem [resolvable:$true] %s468_s20 }
 0x3d1   :  { %s874_s21 = scalar_lea.vmem %s469_s20, 32  ;;  %p879_p7 = scmp.lt.s32.totalorder %s469_s20, %s469_s20 }
 0x3d2   :  { %p875_p6 = scmp.ne.s32.totalorder %s469_s20, %s874_s21  ;;  %p880_p8 = scmp.lt.s32.totalorder %s874_s21, %s874_s21 }
 0x3d4   :  { %p881_p9 = por %p880_p8, %p879_p7 }
 0x3d6   :  { %p882_p10 = pnand %p881_p9, %p875_p6 }
 0x499   :  { %v456_v39 = vpop.f32.mrb[0].mxu1 }
 0x49a   :  { %740 = vtanh.f32 %v456_v39  ;;  %v648_v10 = vpop.f32.mrb[1].mxu1 }
 0x4a4   :  { %v741_v11 = vpop.eup %740 }
 0x4a5   :  { %461 = vst [vmem:[#allocation12] sm:$0x3] %v741_v11 }
 0x4a6   :  { %885 = shalt.err (!%p882_p10)
}
 0x4a7   :  { %s886_s14 = scalar_lea.hbm %s1115_s5, 32 }
 0x4a8   :  { %p887_p11 = scmp.ne.s32.totalorder %s1115_s5, %s886_s14  ;;  %p890_p12 = scmp.lt.u32.totalorder %s886_s14, %s1115_s5 }
 0x4aa   :  { %p892_p13 = pnand %p890_p12, %p887_p11 }
 0x4ac   :  { %895 = shalt.err (!%p892_p13)
}
 0x4ad   :  { %471 = dma.vmem_to_hbm [thread:$0]  %s469_s20, 32, %s1115_s5, [#allocation5]  }
 0x4ae   :  { %902 = dma.done.wait [#allocation5], 32  }
 0x4af   :  { %903 = vsyncadd [#allocation5], 4294967264 }
 0x4b0   :  { %904 = dma.done.wait [#allocation14], 32  }
 0x4b1   :  { %905 = vsyncadd [#allocation14], 4294967264 }
 0x4b2   :  { %488 = vsyncpa [#allocation4], 1 }
 0x4b3   :  { %489 = vsyncpa [#allocation7], 1 }
 0x4b4   :  { %490 = vsyncpa [#allocation10], 1 }
 0x4b5   :  { %491 = vsyncpa [#allocation5], 1 }
 0x4b6   :  { %492 = vsyncpa [#allocation14], 1 }

</bundles_post_ra>
